<compile_context>
chip_gen: v6e
topology: v6e:2x2x1
jax: 0.10.0
libtpu: 0.0.40
codegen_flags: <defaults>
</compile_context>

<pallas_src>
import functools

import jax
import jax.numpy as jnp
from jax import lax
from jax.experimental import pallas as pl
from jax.experimental.pallas import tpu as pltpu

_VMEM_LIMIT = 32 * 1024 * 1024   # scoped VMEM request: safe on v5e/v6e/v7x


def _modulate(one_minus_pt, gamma):
    g = float(gamma)
    if g == int(g) and g >= 0:
        return one_minus_pt ** int(g)      # integer_pow -> pure VPU multiplies
    return one_minus_pt ** g


def _focal_block(x_ref, t_ref, *, ignore_index, alpha, gamma):
    """Per-pixel focal loss for one block.

    x_ref: (1, C, TR, 128) logits (f32 or bf16), t_ref: (1, TR, 128) int32.
    Returns (TR, 128) float32.
    """
    c = x_ref.shape[1]
    needs_cast = x_ref.dtype != jnp.float32

    def cls(ci):
        xc = x_ref[0, ci]
        return xc.astype(jnp.float32) if needs_cast else xc

    t = t_ref[0]                                          # (TR, 128) int32

    # Pass 1: running max over classes (major axis -> plain VPU max).
    m = cls(0)
    for ci in range(1, c):
        m = jnp.maximum(m, cls(ci))

    # Pass 2: sum of exp + gather of the target logit via scalar-constant
    # compares (no dynamic gather / iota needed).
    s = jnp.zeros_like(m)
    x_t = jnp.zeros_like(m)
    for ci in range(c):
        xc = cls(ci)
        s = s + jnp.exp(xc - m)
        x_t = x_t + jnp.where(t == ci, xc, 0.0)

    ce = jnp.log(s) + m - x_t                             # logsumexp - x[target]
    ce = jnp.where(t == ignore_index, 0.0, ce)            # ignored pixels -> 0
    pt = jnp.exp(-ce)
    one_minus_pt = jnp.maximum(1.0 - pt, 0.0)             # guard fp round-off
    return alpha * _modulate(one_minus_pt, gamma) * ce


def _focal_pixel_kernel(x_ref, t_ref, o_ref, *, ignore_index, alpha, gamma):
    # o_ref: (1, TR, 128) per-pixel focal loss (lane+sublane dense stores).
    o_ref[0] = _focal_block(x_ref, t_ref, ignore_index=ignore_index,
                            alpha=alpha, gamma=gamma)


def _focal_sum_kernel(x_ref, t_ref, o_ref, *, ignore_index, alpha, gamma):
    # o_ref: (1, 1, 128) per-image partial sums, resident across the pixel axis.
    @pl.when(pl.program_id(1) == 0)
    def _():
        o_ref[...] = jnp.zeros_like(o_ref)

    focal = _focal_block(x_ref, t_ref, ignore_index=ignore_index,
                         alpha=alpha, gamma=gamma)        # (TR, 128)
    o_ref[0] = o_ref[0] + jnp.sum(focal, axis=0, keepdims=True)


def _choose_tile_rows(rows, c, in_bytes, n, *, budget_bytes=12 * 1024 * 1024,
                      max_rows=256):
    """Pick how many 128-pixel rows go into each block.

    Must divide `rows` and be a multiple of 8 (or the full extent).  Sized so
    double-buffered logits + targets + loss tiles stay well inside the scoped
    VMEM limit on every generation (v7x has only 64 MiB physical).
    """
    per_row = 128 * (2 * c * in_bytes + 2 * 4 + 2 * 4)    # 2 pipeline buffers
    cap = int(max(1, min(max_rows, budget_bytes // per_row, rows)))
    candidates = [t for t in range(1, cap + 1)
                  if rows % t == 0 and (t % 8 == 0 or t == rows)]
    if not candidates:
        fallback = [t for t in range(8, rows + 1, 8) if rows % t == 0]
        return min(fallback) if fallback else rows
    # Prefer >= 2 grid programs so both v7x TensorCores get work.
    split = [t for t in candidates if n * (rows // t) >= 2]
    return max(split) if split else max(candidates)


def _grid_spec(n, c, rows, tile_rows, *, per_pixel_out):
    in_specs = [
        pl.BlockSpec((1, c, tile_rows, 128), lambda i, j: (i, 0, j, 0)),
        pl.BlockSpec((1, tile_rows, 128), lambda i, j: (i, j, 0)),
    ]
    if per_pixel_out:
        out_specs = pl.BlockSpec((1, tile_rows, 128), lambda i, j: (i, j, 0))
    else:
        out_specs = pl.BlockSpec((1, 1, 128), lambda i, j: (i, 0, 0))
    return pltpu.PrefetchScalarGridSpec(
        num_scalar_prefetch=0,
        grid=(n, rows // tile_rows),
        in_specs=in_specs,
        out_specs=out_specs,
    )


def _prep_inputs(x, target):
    n, c, h, w = x.shape
    p = h * w
    assert p % 128 == 0, "H*W must be a multiple of 128 (lane width)"
    rows = p // 128
    tile_rows = _choose_tile_rows(rows, c, x.dtype.itemsize, n)
    x_v = x.reshape(n, c, rows, 128)
    t_v = target.reshape(n, rows, 128).astype(jnp.int32)
    return x_v, t_v, n, c, rows, tile_rows, p


def per_pixel_focal_loss(x, target, *, alpha=0.25, gamma=2.0, ignore_index=-100):
    """x: (N, C, H, W) float; target: (N, H, W) int -> (N, H, W) float32."""
    n, _, h, w = x.shape
    x_v, t_v, n, c, rows, tile_rows, _ = _prep_inputs(x, target)

    kernel = functools.partial(_focal_pixel_kernel, ignore_index=ignore_index,
                               alpha=alpha, gamma=gamma)
    loss = pl.pallas_call(
        kernel,
        out_shape=jax.ShapeDtypeStruct((n, rows, 128), jnp.float32),
        grid_spec=_grid_spec(n, c, rows, tile_rows, per_pixel_out=True),
        compiler_params=pltpu.CompilerParams(
            dimension_semantics=("parallel", "parallel"),
            vmem_limit_bytes=_VMEM_LIMIT,
        ),
    )(x_v, t_v)
    return loss.reshape(n, h, w)


def _mean_focal_loss(x, target, *, alpha, gamma, ignore_index):
    """Fused k == 1.0 path: in-kernel sum, no per-pixel loss written to HBM."""
    x_v, t_v, n, c, rows, tile_rows, p = _prep_inputs(x, target)

    kernel = functools.partial(_focal_sum_kernel, ignore_index=ignore_index,
                               alpha=alpha, gamma=gamma)
    partial = pl.pallas_call(
        kernel,
        out_shape=jax.ShapeDtypeStruct((n, 1, 128), jnp.float32),
        grid_spec=_grid_spec(n, c, rows, tile_rows, per_pixel_out=False),
        compiler_params=pltpu.CompilerParams(
            dimension_semantics=("parallel", "arbitrary"),
            vmem_limit_bytes=_VMEM_LIMIT,
        ),
    )(x_v, t_v)
    return jnp.sum(partial) / (n * p)


def topk_focal_loss(x, target, *, k=1.0, alpha=0.25, gamma=2.0,
                    ignore_index=-100):
    """Forward pass of TopKFocalLoss."""
    if k == 1.0:
        return _mean_focal_loss(x, target, alpha=alpha, gamma=gamma,
                                ignore_index=ignore_index)
    loss = per_pixel_focal_loss(x, target, alpha=alpha, gamma=gamma,
                                ignore_index=ignore_index)      # (N, H, W)
    flat = loss.reshape(loss.shape[0], -1)
    kk = int(k * flat.shape[1])
    # TODO(synk): top-k selection has no clean Pallas equivalent; done with lax.top_k.
    valid_loss, _ = lax.top_k(flat, kk)
    return jnp.mean(valid_loss)


def _reference(x, target, *, k=1.0, alpha=0.25, gamma=2.0, ignore_index=-100):
    logp = jax.nn.log_softmax(x.astype(jnp.float32), axis=1)
    t_safe = jnp.where(target == ignore_index, 0, target)
    picked = jnp.take_along_axis(logp, t_safe[:, None, :, :], axis=1)[:, 0]
    ce = jnp.where(target == ignore_index, 0.0, -picked)
    pt = jnp.exp(-ce)
    focal = alpha * _modulate(jnp.maximum(1.0 - pt, 0.0), gamma) * ce
    if k == 1.0:
        return jnp.mean(focal)
    flat = focal.reshape(focal.shape[0], -1)
    kk = int(k * flat.shape[1])
    valid, _ = lax.top_k(flat, kk)
    return jnp.mean(valid)


if __name__ == "__main__":
    key = jax.random.PRNGKey(0)
    kx, kt, km = jax.random.split(key, 3)

    N, C, H, W = 2, 8, 16, 16
    x = jax.random.normal(kx, (N, C, H, W), dtype=jnp.float32)
    target = jax.random.randint(kt, (N, H, W), 0, C, dtype=jnp.int32)
    # Sprinkle in some ignore_index pixels.
    ignore_mask = jax.random.bernoulli(km, 0.1, (N, H, W))
    target = jnp.where(ignore_mask, -100, target)

    # k == 1.0 path (fused mean) and k < 1.0 path (per-pixel loss + top-k mean).
    out1 = jax.block_until_ready(topk_focal_loss(x, target, k=1.0))
    out2 = jax.block_until_ready(topk_focal_loss(x, target, k=0.5))

    ref1 = _reference(x, target, k=1.0)
    ref2 = _reference(x, target, k=0.5)

    assert jnp.allclose(out1, ref1, atol=1e-5, rtol=1e-4), (out1, ref1)
    assert jnp.allclose(out2, ref2, atol=1e-5, rtol=1e-4), (out2, ref2)

    print("KERNEL_OK")
</pallas_src>

<mosaic_0001>
module attributes {stable_mosaic.version = 11 : i64} {
  func.func @_focal_sum_kernel(%arg0: i32, %arg1: i32, %arg2: memref<1x8x2x128xf32, #tpu.memory_space<vmem>>, %arg3: memref<1x2x128xi32, #tpu.memory_space<vmem>>, %arg4: memref<1x1x128xf32, #tpu.memory_space<vmem>>) attributes {dimension_semantics = [#tpu.dimension_semantics<parallel>, #tpu.dimension_semantics<arbitrary>], iteration_bounds = array<i64: 2, 1>, scalar_prefetch = 0 : i64, scratch_operands = 0 : i64, tpu.core_type = #tpu.core_type<tc>, window_params = [{transform_indices = @transform_0, window_bounds = array<i64: 1, 8, 2, 128>}, {transform_indices = @transform_1, window_bounds = array<i64: 1, 2, 128>}, {transform_indices = @transform_2, window_bounds = array<i64: 1, 1, 128>}]} {
    %c0_i32 = arith.constant 0 : i32
    %0 = arith.cmpi eq, %arg1, %c0_i32 : i32
    %1 = arith.extui %0 : i1 to i32
    %c0_i32_0 = arith.constant 0 : i32
    %2 = arith.cmpi ne, %1, %c0_i32_0 : i32
    scf.if %2 {
      %cst_82 = arith.constant 0.000000e+00 : f32
      %136 = vector.broadcast %cst_82 : f32 to vector<1x1x128xf32>
      %c0_83 = arith.constant 0 : index
      %c0_84 = arith.constant 0 : index
      %c0_85 = arith.constant 0 : index
      %137 = vector.load %arg4[%c0_83, %c0_84, %c0_85] : memref<1x1x128xf32, #tpu.memory_space<vmem>>, vector<1x1x128xf32>
      tpu.vector_store %arg4[%c0_83, %c0_84, %c0_85], %136 {strides = array<i32>} : memref<1x1x128xf32, #tpu.memory_space<vmem>>, vector<1x1x128xf32>,
    } else {
    }
    %c0 = arith.constant 0 : index
    %c0_1 = arith.constant 0 : index
    %c0_2 = arith.constant 0 : index
    %3 = vector.load %arg3[%c0, %c0_1, %c0_2] : memref<1x2x128xi32, #tpu.memory_space<vmem>>, vector<1x2x128xi32>
    %4 = vector.shape_cast %3 : vector<1x2x128xi32> to vector<2x128xi32>
    %c0_3 = arith.constant 0 : index
    %c0_4 = arith.constant 0 : index
    %c0_5 = arith.constant 0 : index
    %c0_6 = arith.constant 0 : index
    %5 = vector.load %arg2[%c0_3, %c0_4, %c0_5, %c0_6] : memref<1x8x2x128xf32, #tpu.memory_space<vmem>>, vector<1x1x2x128xf32>
    %6 = vector.shape_cast %5 : vector<1x1x2x128xf32> to vector<2x128xf32>
    %c0_7 = arith.constant 0 : index
    %c1 = arith.constant 1 : index
    %c0_8 = arith.constant 0 : index
    %c0_9 = arith.constant 0 : index
    %7 = vector.load %arg2[%c0_7, %c1, %c0_8, %c0_9] : memref<1x8x2x128xf32, #tpu.memory_space<vmem>>, vector<1x1x2x128xf32>
    %8 = vector.shape_cast %7 : vector<1x1x2x128xf32> to vector<2x128xf32>
    %9 = arith.maximumf %6, %8 : vector<2x128xf32>
    %c0_10 = arith.constant 0 : index
    %c2 = arith.constant 2 : index
    %c0_11 = arith.constant 0 : index
    %c0_12 = arith.constant 0 : index
    %10 = vector.load %arg2[%c0_10, %c2, %c0_11, %c0_12] : memref<1x8x2x128xf32, #tpu.memory_space<vmem>>, vector<1x1x2x128xf32>
    %11 = vector.shape_cast %10 : vector<1x1x2x128xf32> to vector<2x128xf32>
    %12 = arith.maximumf %9, %11 : vector<2x128xf32>
    %c0_13 = arith.constant 0 : index
    %c3 = arith.constant 3 : index
    %c0_14 = arith.constant 0 : index
    %c0_15 = arith.constant 0 : index
    %13 = vector.load %arg2[%c0_13, %c3, %c0_14, %c0_15] : memref<1x8x2x128xf32, #tpu.memory_space<vmem>>, vector<1x1x2x128xf32>
    %14 = vector.shape_cast %13 : vector<1x1x2x128xf32> to vector<2x128xf32>
    %15 = arith.maximumf %12, %14 : vector<2x128xf32>
    %c0_16 = arith.constant 0 : index
    %c4 = arith.constant 4 : index
    %c0_17 = arith.constant 0 : index
    %c0_18 = arith.constant 0 : index
    %16 = vector.load %arg2[%c0_16, %c4, %c0_17, %c0_18] : memref<1x8x2x128xf32, #tpu.memory_space<vmem>>, vector<1x1x2x128xf32>
    %17 = vector.shape_cast %16 : vector<1x1x2x128xf32> to vector<2x128xf32>
    %18 = arith.maximumf %15, %17 : vector<2x128xf32>
    %c0_19 = arith.constant 0 : index
    %c5 = arith.constant 5 : index
    %c0_20 = arith.constant 0 : index
    %c0_21 = arith.constant 0 : index
    %19 = vector.load %arg2[%c0_19, %c5, %c0_20, %c0_21] : memref<1x8x2x128xf32, #tpu.memory_space<vmem>>, vector<1x1x2x128xf32>
    %20 = vector.shape_cast %19 : vector<1x1x2x128xf32> to vector<2x128xf32>
    %21 = arith.maximumf %18, %20 : vector<2x128xf32>
    %c0_22 = arith.constant 0 : index
    %c6 = arith.constant 6 : index
    %c0_23 = arith.constant 0 : index
    %c0_24 = arith.constant 0 : index
    %22 = vector.load %arg2[%c0_22, %c6, %c0_23, %c0_24] : memref<1x8x2x128xf32, #tpu.memory_space<vmem>>, vector<1x1x2x128xf32>
    %23 = vector.shape_cast %22 : vector<1x1x2x128xf32> to vector<2x128xf32>
    %24 = arith.maximumf %21, %23 : vector<2x128xf32>
    %c0_25 = arith.constant 0 : index
    %c7 = arith.constant 7 : index
    %c0_26 = arith.constant 0 : index
    %c0_27 = arith.constant 0 : index
    %25 = vector.load %arg2[%c0_25, %c7, %c0_26, %c0_27] : memref<1x8x2x128xf32, #tpu.memory_space<vmem>>, vector<1x1x2x128xf32>
    %26 = vector.shape_cast %25 : vector<1x1x2x128xf32> to vector<2x128xf32>
    %27 = arith.maximumf %24, %26 : vector<2x128xf32>
    %cst = arith.constant 0.000000e+00 : f32
    %28 = vector.broadcast %cst : f32 to vector<2x128xf32>
    %cst_28 = arith.constant 0.000000e+00 : f32
    %29 = vector.broadcast %cst_28 : f32 to vector<2x128xf32>
    %c0_29 = arith.constant 0 : index
    %c0_30 = arith.constant 0 : index
    %c0_31 = arith.constant 0 : index
    %c0_32 = arith.constant 0 : index
    %30 = vector.load %arg2[%c0_29, %c0_30, %c0_31, %c0_32] : memref<1x8x2x128xf32, #tpu.memory_space<vmem>>, vector<1x1x2x128xf32>
    %31 = vector.shape_cast %30 : vector<1x1x2x128xf32> to vector<2x128xf32>
    %32 = arith.subf %31, %27 : vector<2x128xf32>
    %33 = math.exp %32 : vector<2x128xf32>
    %34 = arith.addf %28, %33 : vector<2x128xf32>
    %c0_i32_33 = arith.constant 0 : i32
    %35 = vector.broadcast %c0_i32_33 : i32 to vector<2x128xi32>
    %36 = arith.cmpi eq, %4, %35 : vector<2x128xi32>
    %cst_34 = arith.constant 0.000000e+00 : f32
    %37 = vector.broadcast %cst_34 : f32 to vector<2x128xf32>
    %38 = arith.select %36, %31, %37 : vector<2x128xi1>, vector<2x128xf32>
    %39 = arith.addf %29, %38 : vector<2x128xf32>
    %c0_35 = arith.constant 0 : index
    %c1_36 = arith.constant 1 : index
    %c0_37 = arith.constant 0 : index
    %c0_38 = arith.constant 0 : index
    %40 = vector.load %arg2[%c0_35, %c1_36, %c0_37, %c0_38] : memref<1x8x2x128xf32, #tpu.memory_space<vmem>>, vector<1x1x2x128xf32>
    %41 = vector.shape_cast %40 : vector<1x1x2x128xf32> to vector<2x128xf32>
    %42 = arith.subf %41, %27 : vector<2x128xf32>
    %43 = math.exp %42 : vector<2x128xf32>
    %44 = arith.addf %34, %43 : vector<2x128xf32>
    %c1_i32 = arith.constant 1 : i32
    %45 = vector.broadcast %c1_i32 : i32 to vector<2x128xi32>
    %46 = arith.cmpi eq, %4, %45 : vector<2x128xi32>
    %cst_39 = arith.constant 0.000000e+00 : f32
    %47 = vector.broadcast %cst_39 : f32 to vector<2x128xf32>
    %48 = arith.select %46, %41, %47 : vector<2x128xi1>, vector<2x128xf32>
    %49 = arith.addf %39, %48 : vector<2x128xf32>
    %c0_40 = arith.constant 0 : index
    %c2_41 = arith.constant 2 : index
    %c0_42 = arith.constant 0 : index
    %c0_43 = arith.constant 0 : index
    %50 = vector.load %arg2[%c0_40, %c2_41, %c0_42, %c0_43] : memref<1x8x2x128xf32, #tpu.memory_space<vmem>>, vector<1x1x2x128xf32>
    %51 = vector.shape_cast %50 : vector<1x1x2x128xf32> to vector<2x128xf32>
    %52 = arith.subf %51, %27 : vector<2x128xf32>
    %53 = math.exp %52 : vector<2x128xf32>
    %54 = arith.addf %44, %53 : vector<2x128xf32>
    %c2_i32 = arith.constant 2 : i32
    %55 = vector.broadcast %c2_i32 : i32 to vector<2x128xi32>
    %56 = arith.cmpi eq, %4, %55 : vector<2x128xi32>
    %cst_44 = arith.constant 0.000000e+00 : f32
    %57 = vector.broadcast %cst_44 : f32 to vector<2x128xf32>
    %58 = arith.select %56, %51, %57 : vector<2x128xi1>, vector<2x128xf32>
    %59 = arith.addf %49, %58 : vector<2x128xf32>
    %c0_45 = arith.constant 0 : index
    %c3_46 = arith.constant 3 : index
    %c0_47 = arith.constant 0 : index
    %c0_48 = arith.constant 0 : index
    %60 = vector.load %arg2[%c0_45, %c3_46, %c0_47, %c0_48] : memref<1x8x2x128xf32, #tpu.memory_space<vmem>>, vector<1x1x2x128xf32>
    %61 = vector.shape_cast %60 : vector<1x1x2x128xf32> to vector<2x128xf32>
    %62 = arith.subf %61, %27 : vector<2x128xf32>
    %63 = math.exp %62 : vector<2x128xf32>
    %64 = arith.addf %54, %63 : vector<2x128xf32>
    %c3_i32 = arith.constant 3 : i32
    %65 = vector.broadcast %c3_i32 : i32 to vector<2x128xi32>
    %66 = arith.cmpi eq, %4, %65 : vector<2x128xi32>
    %cst_49 = arith.constant 0.000000e+00 : f32
    %67 = vector.broadcast %cst_49 : f32 to vector<2x128xf32>
    %68 = arith.select %66, %61, %67 : vector<2x128xi1>, vector<2x128xf32>
    %69 = arith.addf %59, %68 : vector<2x128xf32>
    %c0_50 = arith.constant 0 : index
    %c4_51 = arith.constant 4 : index
    %c0_52 = arith.constant 0 : index
    %c0_53 = arith.constant 0 : index
    %70 = vector.load %arg2[%c0_50, %c4_51, %c0_52, %c0_53] : memref<1x8x2x128xf32, #tpu.memory_space<vmem>>, vector<1x1x2x128xf32>
    %71 = vector.shape_cast %70 : vector<1x1x2x128xf32> to vector<2x128xf32>
    %72 = arith.subf %71, %27 : vector<2x128xf32>
    %73 = math.exp %72 : vector<2x128xf32>
    %74 = arith.addf %64, %73 : vector<2x128xf32>
    %c4_i32 = arith.constant 4 : i32
    %75 = vector.broadcast %c4_i32 : i32 to vector<2x128xi32>
    %76 = arith.cmpi eq, %4, %75 : vector<2x128xi32>
    %cst_54 = arith.constant 0.000000e+00 : f32
    %77 = vector.broadcast %cst_54 : f32 to vector<2x128xf32>
    %78 = arith.select %76, %71, %77 : vector<2x128xi1>, vector<2x128xf32>
    %79 = arith.addf %69, %78 : vector<2x128xf32>
    %c0_55 = arith.constant 0 : index
    %c5_56 = arith.constant 5 : index
    %c0_57 = arith.constant 0 : index
    %c0_58 = arith.constant 0 : index
    %80 = vector.load %arg2[%c0_55, %c5_56, %c0_57, %c0_58] : memref<1x8x2x128xf32, #tpu.memory_space<vmem>>, vector<1x1x2x128xf32>
    %81 = vector.shape_cast %80 : vector<1x1x2x128xf32> to vector<2x128xf32>
    %82 = arith.subf %81, %27 : vector<2x128xf32>
    %83 = math.exp %82 : vector<2x128xf32>
    %84 = arith.addf %74, %83 : vector<2x128xf32>
    %c5_i32 = arith.constant 5 : i32
    %85 = vector.broadcast %c5_i32 : i32 to vector<2x128xi32>
    %86 = arith.cmpi eq, %4, %85 : vector<2x128xi32>
    %cst_59 = arith.constant 0.000000e+00 : f32
    %87 = vector.broadcast %cst_59 : f32 to vector<2x128xf32>
    %88 = arith.select %86, %81, %87 : vector<2x128xi1>, vector<2x128xf32>
    %89 = arith.addf %79, %88 : vector<2x128xf32>
    %c0_60 = arith.constant 0 : index
    %c6_61 = arith.constant 6 : index
    %c0_62 = arith.constant 0 : index
    %c0_63 = arith.constant 0 : index
    %90 = vector.load %arg2[%c0_60, %c6_61, %c0_62, %c0_63] : memref<1x8x2x128xf32, #tpu.memory_space<vmem>>, vector<1x1x2x128xf32>
    %91 = vector.shape_cast %90 : vector<1x1x2x128xf32> to vector<2x128xf32>
    %92 = arith.subf %91, %27 : vector<2x128xf32>
    %93 = math.exp %92 : vector<2x128xf32>
    %94 = arith.addf %84, %93 : vector<2x128xf32>
    %c6_i32 = arith.constant 6 : i32
    %95 = vector.broadcast %c6_i32 : i32 to vector<2x128xi32>
    %96 = arith.cmpi eq, %4, %95 : vector<2x128xi32>
    %cst_64 = arith.constant 0.000000e+00 : f32
    %97 = vector.broadcast %cst_64 : f32 to vector<2x128xf32>
    %98 = arith.select %96, %91, %97 : vector<2x128xi1>, vector<2x128xf32>
    %99 = arith.addf %89, %98 : vector<2x128xf32>
    %c0_65 = arith.constant 0 : index
    %c7_66 = arith.constant 7 : index
    %c0_67 = arith.constant 0 : index
    %c0_68 = arith.constant 0 : index
    %100 = vector.load %arg2[%c0_65, %c7_66, %c0_67, %c0_68] : memref<1x8x2x128xf32, #tpu.memory_space<vmem>>, vector<1x1x2x128xf32>
    %101 = vector.shape_cast %100 : vector<1x1x2x128xf32> to vector<2x128xf32>
    %102 = arith.subf %101, %27 : vector<2x128xf32>
    %103 = math.exp %102 : vector<2x128xf32>
    %104 = arith.addf %94, %103 : vector<2x128xf32>
    %c7_i32 = arith.constant 7 : i32
    %105 = vector.broadcast %c7_i32 : i32 to vector<2x128xi32>
    %106 = arith.cmpi eq, %4, %105 : vector<2x128xi32>
    %cst_69 = arith.constant 0.000000e+00 : f32
    %107 = vector.broadcast %cst_69 : f32 to vector<2x128xf32>
    %108 = arith.select %106, %101, %107 : vector<2x128xi1>, vector<2x128xf32>
    %109 = arith.addf %99, %108 : vector<2x128xf32>
    %110 = math.log %104 : vector<2x128xf32>
    %111 = arith.addf %110, %27 : vector<2x128xf32>
    %112 = arith.subf %111, %109 : vector<2x128xf32>
    %c-100_i32 = arith.constant -100 : i32
    %113 = vector.broadcast %c-100_i32 : i32 to vector<2x128xi32>
    %114 = arith.cmpi eq, %4, %113 : vector<2x128xi32>
    %cst_70 = arith.constant 0.000000e+00 : f32
    %115 = vector.broadcast %cst_70 : f32 to vector<2x128xf32>
    %116 = arith.select %114, %115, %112 : vector<2x128xi1>, vector<2x128xf32>
    %cst_71 = arith.constant 0.000000e+00 : f32
    %117 = vector.broadcast %cst_71 : f32 to vector<2x128xf32>
    %118 = arith.subf %117, %116 : vector<2x128xf32>
    %119 = math.exp %118 : vector<2x128xf32>
    %cst_72 = arith.constant 1.000000e+00 : f32
    %120 = vector.broadcast %cst_72 : f32 to vector<2x128xf32>
    %121 = arith.subf %120, %119 : vector<2x128xf32>
    %cst_73 = arith.constant 0.000000e+00 : f32
    %122 = vector.broadcast %cst_73 : f32 to vector<2x128xf32>
    %123 = arith.maximumf %121, %122 : vector<2x128xf32>
    %124 = arith.mulf %123, %123 : vector<2x128xf32>
    %cst_74 = arith.constant 2.500000e-01 : f32
    %125 = vector.broadcast %cst_74 : f32 to vector<2x128xf32>
    %126 = arith.mulf %125, %124 : vector<2x128xf32>
    %127 = arith.mulf %126, %116 : vector<2x128xf32>
    %c0_75 = arith.constant 0 : index
    %c0_76 = arith.constant 0 : index
    %c0_77 = arith.constant 0 : index
    %128 = vector.load %arg4[%c0_75, %c0_76, %c0_77] : memref<1x1x128xf32, #tpu.memory_space<vmem>>, vector<1x1x128xf32>
    %129 = vector.shape_cast %128 : vector<1x1x128xf32> to vector<1x128xf32>
    %cst_78 = arith.constant dense<0.000000e+00> : vector<128xf32>
    %130 = vector.multi_reduction <add>, %127, %cst_78 [0] : vector<2x128xf32> to vector<128xf32>
    %131 = vector.shape_cast %130 : vector<128xf32> to vector<1x128xf32>
    %132 = arith.addf %129, %131 : vector<1x128xf32>
    %c0_79 = arith.constant 0 : index
    %c0_80 = arith.constant 0 : index
    %c0_81 = arith.constant 0 : index
    %133 = vector.load %arg4[%c0_79, %c0_80, %c0_81] : memref<1x1x128xf32, #tpu.memory_space<vmem>>, vector<1x1x128xf32>
    %134 = vector.shape_cast %133 : vector<1x1x128xf32> to vector<1x128xf32>
    %135 = vector.shape_cast %132 : vector<1x128xf32> to vector<1x1x128xf32>
    tpu.vector_store %arg4[%c0_79, %c0_80, %c0_81], %135 {strides = array<i32>} : memref<1x1x128xf32, #tpu.memory_space<vmem>>, vector<1x1x128xf32>,
    return
  }
  func.func @transform_0(%arg0: i32, %arg1: i32) -> (i32, i32, i32, i32) {
    %c0_i32 = arith.constant 0 : i32
    %c0_i32_0 = arith.constant 0 : i32
    %c0_i32_1 = arith.constant 0 : i32
    return %arg0, %c0_i32, %arg1, %c0_i32_0 : i32, i32, i32, i32
  }
  func.func @transform_1(%arg0: i32, %arg1: i32) -> (i32, i32, i32) {
    %c0_i32 = arith.constant 0 : i32
    %c0_i32_0 = arith.constant 0 : i32
    return %arg0, %arg1, %c0_i32 : i32, i32, i32
  }
  func.func @transform_2(%arg0: i32, %arg1: i32) -> (i32, i32, i32) {
    %c0_i32 = arith.constant 0 : i32
    %c0_i32_0 = arith.constant 0 : i32
    %c0_i32_1 = arith.constant 0 : i32
    return %arg0, %c0_i32, %c0_i32_0 : i32, i32, i32
  }
}

</mosaic_0001>

<bundles_post_ra>
// kernel: tpu_custom_call.1
= control target key start
LH: loop header
LB: loop body
LE: loop exit
PB: predicated region body
PF: predicated region fallthrough
CT: control target
= control target key end

     0   :  { %7 = vsyncpa [#allocation3], 0  ;;  %s912_s0 = inlined_call_operand.hbm [shape: f32[2,8,2,128], index: 0, kind: input, shape index: {}]   ;;  %s913_s1 = inlined_call_operand.hbm [shape: s32[2,2,128], index: 1, kind: input, shape index: {}]   ;;  %s914_s2 = inlined_call_operand.hbm [shape: f32[2,1,128], index: 2, kind: output, shape index: {}]  }
   0x1   :  { %9 = vsyncpa [#allocation3 + $0x1], 0 }
   0x2   :  { %10 = vsyncpa [#allocation6], 0 }
   0x3   :  { %12 = vsyncpa [#allocation6 + $0x1], 0 }
   0x4   :  { %13 = vsyncpa [#allocation4], 0 }
   0x5   :  { %15 = vsyncpa [#allocation4 + $0x1], 0  ;;  %s714_s9 = smov 0   ;;  %s716_s10 = smov 0  }
   0x6   :  { %s718_s11 = smov 0   ;;  %s720_s12 = smov 0  }
   0x7   :  { %s722_s13 = smov 0   ;;  %s724_s14 = smov 0  }
   0x8 LB: > { %s438_s15 = sadd.s32 4294967295, %s691_s14   ;;  %s439_s16 = sadd.s32 4294967294, %s691_s14   ;;  %s691_s14 = sphi %s724_s14, %s21_s14   ;;  %s687_s13 = sphi %s722_s13, %s926_s13   ;;  %s683_s12 = sphi %s720_s12, %s925_s12   ;;  %s679_s11 = sphi %s718_s11, %s924_s11   ;;  %s675_s10 = sphi %s716_s10, %s923_s10   ;;  %s671_s9 = sphi %s714_s9, %s922_s9  }
   0x9   : > { %s33_s17 = sadd.s32 1, %s687_s13  ;;  %s42_s18 = sadd.s32 1, %s679_s11 }
   0xa   : > { %p35_p0 = scmp.ge.s32.totalorder %s33_s17, 2  ;;  %p49_p1 = scmp.ne.s32.totalorder %s679_s11, %s675_s10 }
   0xb   : > { %p50_p2 = scmp.eq.s32.totalorder %s691_s14, 0  ;;  %p55_p3 = scmp.ne.s32.totalorder %s675_s10, %s671_s9 }
   0xc   : > { %s928_s17 = smov (%p35_p0, %s33_s17), 0  ;;  %p56_p5 = scmp.eq.s32.totalorder %s438_s15, 0 }
   0xd   : > { %p755_p4 = por %p50_p2, %p49_p1  ;;  %s37_s20 = ssub.s32 %s687_s13, %s928_s17 }
   0xe   : > { %p107_p6 = scmp.eq.s32.totalorder %s438_s15, 1  ;;  %p40_p7 = scmp.eq.s32.totalorder %s37_s20, 0 }
   0xf   : > { %p761_p8 = por %p56_p5, %p55_p3  ;;  %p113_p10 = scmp.eq.s32.totalorder %s439_s16, 1 }
  0x10   : > { %p765_p9 = por %p107_p6, %p49_p1  ;;  %p478_p13 = scmp.lt.s32.totalorder %s691_s14, 2 }
  0x11   : > { %s770_s23 = scalar_select %p40_p7, %s679_s11, %s42_s18  }
  0x12   : > { %p772_p11 = por %p113_p10, %p55_p3  ;;  %s779_s25 = sand.u32 1, %s679_s11  }
  0x13   : > { %s442_s26 = sshll.u32 %s779_s25, 4  ;;  %s460_s27 = sshll.u32 %s687_s13, 8 }
  0x14   : > { %s144_s30 = scalar_lea.hbm %s912_s0, %s460_s27  ;;  %s137_s3 = scalar_lea.vmem [#allocation2], %s442_s26 }
  0x15   : > { %s145_s4 = sshll.u32 %s137_s3, 4  ;;  %p788_p0 = pnand %p478_p13, %p755_p4  ;;  %s146_s4 = int_to_ptr.vmem [resolvable:$true] %s145_s4 }
  0x16   : > { %p447_p1 = scmp.ge.s32.totalorder %s691_s14, 1  ;;  %s134_s6 = scalar_lea.sflag [#allocation3], %s779_s25 }
  0x17   : > { %p553_p2 = pneg %p788_p0  ;;  %s564_s7 = scalar_lea.vmem %s146_s4, 256 }
  0x18   : > { %p565_p3 = scmp.ne.s32.totalorder %s146_s4, %s564_s7  ;;  %s693_s8 = smov [#allocation2]  }
  0x19   : > { %s569_s15 = sshll.u32 %s693_s8, 4  ;;  %s570_s15 = int_to_ptr.vmem [resolvable:$false] %s569_s15 }
  0x1a   : > { %p567_p5 = pnand %p565_p3, %p553_p2  ;;  %s571_s16 = scalar_lea.vmem %s570_s15, 512 }
  0x1b   : > { %p572_p4 = scmp.lt.s32.totalorder %s146_s4, %s570_s15  ;;  %p573_p7 = scmp.lt.s32.totalorder %s571_s16, %s564_s7 }
  0x1c   : > { %p568_p6 = pneg %p567_p5 }
  0x1d   : > { %p574_p10 = por %p573_p7, %p572_p4 }
  0x1f   : > { %p575_p13 = pnand %p574_p10, %p568_p6 }
  0x21   : > { %578 = shalt.err (!%p575_p13)
}
  0x22   : > { %s694_s18 = smov 32   ;;  %s695_s19 = smov 2  }
  0x23   : > { %470 = dma.hbm_to_vmem [thread:$0]  (!%p788_p0), %s144_s30, 256, %s146_s4, %s134_s6, %s694_s18, %s694_s18, %s695_s19  }
  0x24   : > { %p172_p3 = scmp.lt.s32.totalorder %s691_s14, 3  ;;  %s445_s20 = sshll.u32 %s779_s25, 1 }
  0x25   : > { %s446_s26 = sshll.u32 %s687_s13, 5  ;;  %s159_s7 = scalar_lea.vmem [#allocation5], %s445_s20 }
  0x26   : > { %p806_p5 = pnand %p447_p1, %p172_p3  ;;  %s165_s3 = scalar_lea.hbm %s913_s1, %s446_s26 }
  0x27   : > { %s167_s8 = sshll.u32 %s159_s7, 4  ;;  %s156_s15 = scalar_lea.sflag [#allocation6], %s779_s25  ;;  %s168_s8 = int_to_ptr.vmem [resolvable:$true] %s167_s8 }
  0x28   : > { %s592_s16 = scalar_lea.vmem %s168_s8, 32  ;;  %s696_s30 = smov [#allocation5]  }
  0x29   : > { %p593_p6 = scmp.ne.s32.totalorder %s168_s8, %s592_s16  ;;  %s597_s4 = sshll.u32 %s696_s30, 4  ;;  %s598_s4 = int_to_ptr.vmem [resolvable:$false] %s597_s4 }
  0x2a   : > { %s599_s6 = scalar_lea.vmem %s598_s4, 64  ;;  %p600_p1 = scmp.lt.s32.totalorder %s168_s8, %s598_s4 }
  0x2b   : > { %p595_p4 = pnand %p593_p6, %p553_p2  ;;  %p601_p10 = scmp.lt.s32.totalorder %s599_s6, %s592_s16 }
  0x2d   : > { %p596_p7 = pneg %p595_p4  ;;  %p602_p13 = por %p601_p10, %p600_p1 }
  0x2f   : > { %p603_p3 = pnand %p602_p13, %p596_p7 }
  0x31   : > { %606 = shalt.err (!%p603_p3)
}
  0x32   : > { %473 = dma.hbm_to_vmem [thread:$0]  (!%p788_p0), %s165_s3, 32, %s168_s8, %s156_s15  }
  0x33   : > { %176 = sbr.rel (%p806_p5) target bundleno = 186 (0xba), region = 28  ;;  %s822_s25 = sand.u32 (!%p806_p5), 1, %s675_s10  }
  0x34   : > { %s448_s18 = sshll.u32 (!%p806_p5), %s822_s25, 4  ;;  %s179_s19 = scalar_lea.sflag (!%p806_p5), [#allocation3], %s822_s25 }
  0x35   : > { %s182_s20 = scalar_lea.vmem (!%p806_p5), [#allocation2], %s448_s18 }
  0x38   : > { %658 = dma.done.wait (%p761_p8), %s179_s19, 256  }
  0x39   : > { %660 = vsyncadd (%p761_p8), %s179_s19, 4294967040  ;;  %s449_s5 = sshll.u32 %s822_s25, 1  ;;  %s188_s26 = scalar_lea.sflag [#allocation6], %s822_s25 }
  0x3a   : > { %s832_s27 = scalar_lea.vmem [#allocation5], %s449_s5 }
  0x3b   : > { %662 = dma.done.wait (%p761_p8), %s188_s26, 32  }
  0x3c   : > { %664 = vsyncadd (%p761_p8), %s188_s26, 4294967264  ;;  %s839_s28 = scalar_lea.vmem [#allocation7], %s822_s25  ;;  %v697_v0 = vmov 0.0   ;;  %v222_v1 = vld [vmem:[%s182_s20] sm:$0x3]  ;;  %vm315_vm9 = vcmask 1041408  }
  0x3d   : > { %220 = vst [vmem:[%s839_s28] sm:$0x1] %v697_v0  ;;  %v450_v2 = vld [vmem:[%s182_s20 + $0x2] sm:$0x3]  ;;  %v451_v4 = vld [vmem:[%s182_s20 + $0x4] sm:$0x3]  ;;  %s457_s21 = sshll.u32 %s683_s12, 4 }
  0x3e   : > { %v225_v3 = vmax.f32 %v222_v1, %v450_v2  ;;  %v452_v5 = vld [vmem:[%s182_s20 + $0x6] sm:$0x3]  ;;  %v453_v7 = vld [vmem:[%s182_s20 + $0x8] sm:$0x3]  ;;  %v842_v9 = vld [vmem:[%s182_s20 + $0xa] sm:$0x3]  ;;  %s336_s8 = scalar_lea.hbm %s914_s2, %s457_s21 }
  0x3f   : > { %v844_v11 = vld [vmem:[%s182_s20 + $0xc] sm:$0x3]  ;;  %v847_v13 = vld [vmem:[%s182_s20 + $0xe] sm:$0x3]  ;;  %v221_v32 = vld [vmem:[%s832_s27] sm:$0x3] }
  0x40   : > { %v228_v6 = vmax.f32 %v225_v3, %v451_v4  ;;  %vm248_vm0 = vcmp.eq.s32.totalorder %v221_v32, 0  ;;  %vm255_vm1 = vcmp.eq.s32.totalorder %v221_v32, 1  ;;  %vm262_vm2 = vcmp.eq.s32.totalorder %v221_v32, 2  ;;  %s338_s29 = sshll.u32 %s839_s28, 4  ;;  %s326_s15 = scalar_lea.sflag [#allocation4], %s822_s25  ;;  %s339_s29 = int_to_ptr.vmem [resolvable:$true] %s338_s29 }
  0x41   : > { %v249_v38 = vsel %vm248_vm0, %v222_v1, 0.0  ;;  %v256_v39 = vsel %vm255_vm1, %v450_v2, 0.0  ;;  %v263_v45 = vsel %vm262_vm2, %v451_v4, 0.0  ;;  %vm269_vm3 = vcmp.eq.s32.totalorder %v221_v32, 3  ;;  %s607_s16 = scalar_lea.vmem %s339_s29, 16  ;;  %s698_s30 = smov [#allocation7]  }
  0x42   : > { %v231_v8 = vmax.f32 %v228_v6, %v452_v5  ;;  %v257_v42 = vadd.f32 %v256_v39, %v249_v38  ;;  %v270_v51 = vsel %vm269_vm3, %v452_v5, 0.0  ;;  %vm276_vm4 = vcmp.eq.s32.totalorder %v221_v32, 4  ;;  %p608_p8 = scmp.ne.s32.totalorder %s339_s29, %s607_s16  ;;  %s611_s4 = sshll.u32 %s698_s30, 4  ;;  %s612_s4 = int_to_ptr.vmem [resolvable:$false] %s611_s4 }
  0x43   : > { %v277_v55 = vsel %vm276_vm4, %v453_v7, 0.0  ;;  %vm283_vm5 = vcmp.eq.s32.totalorder %v221_v32, 5  ;;  %vm290_vm6 = vcmp.eq.s32.totalorder %v221_v32, 6  ;;  %vm297_vm7 = vcmp.eq.s32.totalorder %v221_v32, 7  ;;  %s613_s6 = scalar_lea.vmem %s612_s4, 32  ;;  %p614_p5 = scmp.lt.s32.totalorder %s339_s29, %s612_s4 }
  0x44   : > { %v234_v10 = vmax.f32 %v231_v8, %v453_v7  ;;  %v264_v48 = vadd.f32 %v263_v45, %v257_v42  ;;  %v284_v57 = vsel %vm283_vm5, %v842_v9, 0.0  ;;  %v291_v59 = vsel %vm290_vm6, %v844_v11, 0.0  ;;  %p609_p0 = pnand %p608_p8, %p765_p9  ;;  %p615_p6 = scmp.lt.s32.totalorder %s613_s6, %s607_s16 }
  0x45   : > { %v298_v61 = vsel %vm297_vm7, %v847_v13, 0.0  ;;  %vm304_vm8 = vcmp.eq.s32.totalorder %v221_v32, 4294967196 }
  0x46   : > { %v237_v12 = vmax.f32 %v234_v10, %v842_v9  ;;  %v271_v53 = vadd.f32 %v270_v51, %v264_v48  ;;  %p610_p2 = pneg %p609_p0  ;;  %p616_p4 = por %p615_p6, %p614_p5 }
  0x48   : > { %v240_v14 = vmax.f32 %v237_v12, %v844_v11  ;;  %v278_v56 = vadd.f32 %v277_v55, %v271_v53  ;;  %p617_p7 = pnand %p616_p4, %p610_p2 }
  0x4a   : > { %v851_v15 = vmax.f32 %v240_v14, %v847_v13  ;;  %v285_v58 = vadd.f32 %v284_v57, %v278_v56 }
  0x4c   : > { %v244_v16 = vsub.f32 %v222_v1, %v851_v15  ;;  %v251_v17 = vsub.f32 %v450_v2, %v851_v15  ;;  %v258_v18 = vsub.f32 %v451_v4, %v851_v15  ;;  %v265_v19 = vsub.f32 %v452_v5, %v851_v15 }
  0x4d   : > { %v272_v20 = vsub.f32 %v453_v7, %v851_v15  ;;  %v279_v25 = vsub.f32 %v842_v9, %v851_v15  ;;  %v286_v27 = vsub.f32 %v844_v11, %v851_v15  ;;  %v293_v29 = vsub.f32 %v847_v13, %v851_v15 }
  0x4e   : > { %v245_v21 = vmul.f32 1.442695, %v244_v16  ;;  %v252_v22 = vmul.f32 1.442695, %v251_v17  ;;  %v259_v23 = vmul.f32 1.442695, %v258_v18  ;;  %v292_v60 = vadd.f32 %v291_v59, %v285_v58 }
  0x4f   : > { %v266_v24 = vmul.f32 1.442695, %v265_v19  ;;  %v273_v26 = vmul.f32 1.442695, %v272_v20  ;;  %v280_v28 = vmul.f32 1.442695, %v279_v25 }
  0x50   : > { %531 = vpow2.f32 %v245_v21  ;;  %v287_v30 = vmul.f32 1.442695, %v286_v27  ;;  %v294_v31 = vmul.f32 1.442695, %v293_v29  ;;  %v299_v63 = vadd.f32 %v298_v61, %v292_v60  ;;  %v314_v18 = vld [vmem:[%s839_s28] sm:$0x1] }
  0x51   : > { %533 = vpow2.f32 %v252_v22 }
  0x52   : > { %535 = vpow2.f32 %v259_v23 }
  0x53   : > { %537 = vpow2.f32 %v266_v24 }
  0x54   : > { %539 = vpow2.f32 %v273_v26 }
  0x55   : > { %541 = vpow2.f32 %v280_v28 }
  0x56   : > { %543 = vpow2.f32 %v287_v30 }
  0x57   : > { %545 = vpow2.f32 %v294_v31 }
  0x5d   : > { %v532_v33 = vpop.eup %531 }
  0x5e   : > { %v534_v34 = vpop.eup %533 }
  0x5f   : > { %v536_v35 = vpop.eup %535  ;;  %v254_v36 = vadd.f32 %v534_v34, %v532_v33 }
  0x60   : > { %v538_v37 = vpop.eup %537 }
  0x61   : > { %v261_v40 = vadd.f32 %v536_v35, %v254_v36  ;;  %v540_v41 = vpop.eup %539 }
  0x62   : > { %v542_v44 = vpop.eup %541 }
  0x63   : > { %v268_v43 = vadd.f32 %v538_v37, %v261_v40  ;;  %v544_v47 = vpop.eup %543 }
  0x64   : > { %v546_v50 = vpop.eup %545 }
  0x65   : > { %v275_v46 = vadd.f32 %v540_v41, %v268_v43 }
  0x67   : > { %v282_v49 = vadd.f32 %v542_v44, %v275_v46 }
  0x69   : > { %v289_v52 = vadd.f32 %v544_v47, %v282_v49 }
  0x6b   : > { %v296_v54 = vadd.f32 %v546_v50, %v289_v52 }
  0x6d   : > { %547 = vlog2.f32 %v296_v54 }
  0x7a   : > { %v548_v62 = vpop.eup %547 }
  0x7b   : > { %v301_v0 = vmul.f32 0.6931472, %v548_v62 }
  0x7d   : > { %v302_v1 = vadd.f32 %v301_v0, %v851_v15 }
  0x7f   : > { %v303_v2 = vsub.f32 %v302_v1, %v299_v63 }
  0x81   : > { %v305_v3 = vsel %vm304_vm8, 0.0, %v303_v2 }
  0x82   : > { %v306_v4 = vsub.f32 0.0, %v305_v3 }
  0x84   : > { %v307_v5 = vmul.f32 1.442695, %v306_v4 }
  0x86   : > { %549 = vpow2.f32 %v307_v5 }
  0x93   : > { %v550_v6 = vpop.eup %549 }
  0x94   : > { %v309_v7 = vsub.f32 1.0, %v550_v6 }
  0x96   : > { %v310_v8 = vmax.f32 %v309_v7, 0.0 }
  0x98   : > { %v311_v9 = vmul.f32 %v310_v8, %v310_v8 }
  0x9a   : > { %v312_v10 = vmul.f32 0.25, %v311_v9 }
  0x9c   : > { %v313_v11 = vmul.f32 %v312_v10, %v305_v3 }
  0x9e   : > { %v316_v12 = vsel %vm315_vm9, %v313_v11, 0.0 }
  0x9f   : > { %v317_v13 = vrot.slane %v316_v12, 4 }
  0xa1   : > { %v318_v14 = vadd.f32 %v317_v13, %v316_v12 }
  0xa3   : > { %v319_v15 = vrot.slane %v318_v14, 2 }
  0xa5   : > { %v320_v16 = vadd.f32 %v319_v15, %v318_v14 }
  0xa7   : > { %v321_v17 = vrot.slane %v320_v16, 1 }
  0xa9   : > { %v322_v19 = vadd.f32 %v321_v17, %v320_v16 }
  0xab   : > { %v323_v20 = vadd.f32 %v322_v19, %v314_v18 }
  0xad   : > { %324 = vst [vmem:[%s839_s28] sm:$0x1] %v323_v20 }
  0xae   : > { %620 = shalt.err (!%p617_p7)
}
  0xaf   : > { %s621_s12 = scalar_lea.hbm %s336_s8, 16  ;;  %s625_s19 = scalar_lea.hbm %s914_s2, 32 }
  0xb0   : > { %p622_p1 = scmp.ne.s32.totalorder %s336_s8, %s621_s12  ;;  %p626_p3 = scmp.lt.s32.totalorder %s336_s8, %s914_s2 }
  0xb1   : > { %p627_p8 = scmp.lt.s32.totalorder %s625_s19, %s621_s12 }
  0xb2   : > { %p623_p10 = pnand %p622_p1, %p765_p9 }
  0xb3   : > { %p628_p0 = por %p627_p8, %p626_p3 }
  0xb4   : > { %p624_p13 = pneg %p623_p10 }
  0xb6   : > { %p629_p12 = pnand %p628_p0, %p624_p13 }
  0xb8   : > { %632 = shalt.err (!%p629_p12)
}
  0xb9   : > { %465 = dma.vmem_to_hbm [thread:$0]  (%p765_p9), %s339_s29, 16, %s336_s8, %s326_s15  }
  0xba PF: > { %s350_s26 = sand.u32 1, %s671_s9   ;;  %p921_p2 = scmp.ge.s32.totalorder %s691_s14, 2 }
  0xbb   : > { %s351_s27 = scalar_lea.sflag [#allocation4], %s350_s26 }
  0xbc   : > { %p475_p5 = pnand %p921_p2, %p772_p11 }
  0xbe   : > { %p476_p6 = pneg %p475_p5 }
  0xc0   : > { %666 = dma.done.wait (%p476_p6), %s351_s27, 16  }
  0xc1   : > { %668 = vsyncadd (%p476_p6), %s351_s27, 4294967280  ;;  %s21_s14 = sadd.s32 1, %s691_s14   ;;  %s922_s9 = smov %s675_s10 }
  0xc2   : > { %p18_p4 = scmp.ge.s32.totalorder %s21_s14, 4   ;;  %s923_s10 = smov %s679_s11 }
  0xc3   : > { %s924_s11 = smov %s770_s23  ;;  %s925_s12 = smov %s687_s13 }
  0xc4   : > { %s926_s13 = smov %s928_s17  ;;  %20 = sbr.rel (!%p18_p4) target bundleno = 8 (0x8), region = 97 }
  0xc9   :  { %355 = vsyncpa [#allocation3], 1 }
  0xca   :  { %357 = vsyncpa [#allocation3 + $0x1], 1 }
  0xcb   :  { %358 = vsyncpa [#allocation6], 1 }
  0xcc   :  { %360 = vsyncpa [#allocation6 + $0x1], 1 }
  0xcd   :  { %361 = vsyncpa [#allocation4], 1 }
  0xce   :  { %363 = vsyncpa [#allocation4 + $0x1], 1 }

</bundles_post_ra>
